<compile_context>
chip_gen: v7x
topology: tpu7x:2x2x1
jax: 0.10.0
libtpu: 0.0.40
codegen_flags: <defaults>
</compile_context>

<pallas_src>
import jax
import jax.numpy as jnp
from jax.experimental import pallas as pl
from jax.experimental.pallas import tpu as pltpu

# ----------------------------- "config" ------------------------------------
INTENT_DIM = 16                 # config.DeepShare_user_hidden_dims[1]
PROJ_DIM = 32                   # config.DeepShare_proj_dim
LOC_NUM = 10                    # config.DeepShare_location_new_num
CATE_NUM = 8                    # config.DeepShare_cate_new_num
ID_EMBD = 16                    # config.id_embd_num
PRED_DIM0 = 64                  # config.DeepShare_predictor_dim[0]
PRED_DIM1 = 1                   # config.DeepShare_predictor_dim[1]

# Lane layout of the packed bf16 activation slab (128 lanes per row).
PACK_DIM = 128
_INTENT_OFF = 0                                   # 4 * 16 = 64 lanes
_PRICE_OFF = _INTENT_OFF + 4 * INTENT_DIM         # 64
_LOC_OFF = _PRICE_OFF + 1                         # 65
_CATE_OFF = _LOC_OFF + LOC_NUM                    # 75
_U_OFF = _CATE_OFF + CATE_NUM                     # 83
_I_OFF = _U_OFF + ID_EMBD                         # 99
_PACK_USED = _I_OFF + ID_EMBD                     # 115 (13 zero pad lanes)


def _round_up(x, m):
    return ((x + m - 1) // m) * m


# ------------------------------- kernel -------------------------------------
def _image_share_kernel(x_ref, w_ref, slab_ref, out_ref):
    # x_ref    : [PACK_DIM, TM]        bf16   packed activations, batch on lanes
    # w_ref    : [PRED_DIM0, PACK_DIM] bf16   folded pre-ReLU weight (transposed)
    # slab_ref : [PRED_DIM0, 3]        f32    col0 = folded bias, col1 = w2, [0,2] = b2
    # out_ref  : [1, TM]               f32    lane-dense sigmoid output
    h = jnp.dot(w_ref[...], x_ref[...],
                preferred_element_type=jnp.float32)            # [64, TM]  (MXU)
    h = jnp.maximum(h + slab_ref[:, 0:1], 0.0)                 # bias + ReLU (f32, VPU)
    # Linear(64 -> 1): VPU multiply + cross-sublane reduce; result is already
    # in the lane-dense [1, TM] layout the output block wants.
    logits = jnp.sum(h * slab_ref[:, 1:2], axis=0, keepdims=True) + slab_ref[0:1, 2:3]
    out_ref[...] = jax.nn.sigmoid(logits)


# ------------------------------ parameters ----------------------------------
def init_params(key):
    ks = jax.random.split(key, 10)
    s = 0.1

    def n(k, shape):
        return (s * jax.random.normal(k, shape)).astype(jnp.float32)

    return {
        "w_intent": n(ks[0], (4 * INTENT_DIM, PROJ_DIM)),
        "b_intent": n(ks[1], (1, PROJ_DIM)),
        "w_price": n(ks[2], (1, PROJ_DIM)),
        "b_price": n(ks[3], (1, PROJ_DIM)),
        "loc_table": n(ks[4], (LOC_NUM, PROJ_DIM)),
        "cate_table": n(ks[5], (CATE_NUM, PROJ_DIM)),
        "w1": n(ks[6], (4 * PROJ_DIM + 2 * ID_EMBD, PRED_DIM0)),
        "b1": n(ks[7], (1, PRED_DIM0)),
        "w2_row": n(ks[8], (1, PRED_DIM0)),   # W2 stored as its single output row
        "b2": n(ks[9], (1, PRED_DIM1)),
    }


# --------------------------- trace-time folding ------------------------------
def _fold_params(params):
    """Fold intent_proj / price_proj / both embeddings / predictor[0] into one
    [PACK_DIM, PRED_DIM0] weight + [PRED_DIM0] bias.  All algebra in f32; the
    combined weight is cast to bf16 exactly once."""
    f32 = jnp.float32
    D, E = PROJ_DIM, ID_EMBD
    w1 = params["w1"].astype(f32)

    w_comb = jnp.zeros((PACK_DIM, PRED_DIM0), f32)
    w_comb = w_comb.at[_INTENT_OFF:_INTENT_OFF + 4 * INTENT_DIM].set(
        params["w_intent"].astype(f32) @ w1[0 * D:1 * D])
    w_comb = w_comb.at[_PRICE_OFF:_PRICE_OFF + 1].set(
        params["w_price"].astype(f32) @ w1[1 * D:2 * D])
    w_comb = w_comb.at[_LOC_OFF:_LOC_OFF + LOC_NUM].set(
        params["loc_table"].astype(f32) @ w1[2 * D:3 * D])
    w_comb = w_comb.at[_CATE_OFF:_CATE_OFF + CATE_NUM].set(
        params["cate_table"].astype(f32) @ w1[3 * D:4 * D])
    w_comb = w_comb.at[_U_OFF:_U_OFF + E].set(w1[4 * D:4 * D + E])
    w_comb = w_comb.at[_I_OFF:_I_OFF + E].set(w1[4 * D + E:4 * D + 2 * E])

    b_comb = (params["b_intent"].astype(f32) @ w1[0 * D:1 * D]
              + params["b_price"].astype(f32) @ w1[1 * D:2 * D]
              + params["b1"].astype(f32))                       # [1, PRED_DIM0]

    w_comb_t = w_comb.T.astype(jnp.bfloat16)                    # [PRED_DIM0, PACK_DIM]
    b2_col = jnp.zeros((PRED_DIM0, 1), f32).at[0, 0].set(params["b2"][0, 0])
    slab = jnp.concatenate(
        [b_comb.reshape(PRED_DIM0, 1),
         params["w2_row"].astype(f32).reshape(PRED_DIM0, 1),
         b2_col], axis=1)                                       # [PRED_DIM0, 3] f32
    return w_comb_t, slab


def _pack_inputs(food_intent, service_intent, ambience_intent, price_intent,
                 price_differ, cate_differ, location_differ,
                 u_id_embd, i_id_embd):
    """One lane-dense bf16 [bs, 128] activation slab (pure layout plumbing)."""
    bf16 = jnp.bfloat16
    bs = food_intent.shape[0]
    loc_oh = jax.nn.one_hot(location_differ.reshape(bs).astype(jnp.int32),
                            LOC_NUM, dtype=bf16)
    cate_oh = jax.nn.one_hot(cate_differ.reshape(bs).astype(jnp.int32),
                             CATE_NUM, dtype=bf16)
    return jnp.concatenate([
        food_intent.astype(bf16), service_intent.astype(bf16),
        ambience_intent.astype(bf16), price_intent.astype(bf16),
        price_differ.reshape(bs, 1).astype(bf16),
        loc_oh, cate_oh,
        u_id_embd.astype(bf16), i_id_embd.astype(bf16),
        jnp.zeros((bs, PACK_DIM - _PACK_USED), bf16),
    ], axis=1)                                                  # [bs, 128]


# ------------------------------- wrapper -------------------------------------
def image_share_predictor(params, rating_ref, food_intent, service_intent,
                          ambience_intent, price_intent, price_differ,
                          cate_differ, location_differ, hist_post_img,
                          u_id_embd, i_id_embd, *, block_m=None):
    del rating_ref, hist_post_img   # unused by the PyTorch forward as well
    f32 = jnp.float32
    bs = food_intent.shape[0]

    if block_m is None:
        # Big lane-dense tiles amortize the ~0.35us per-grid-step overhead; aim
        # for >= 2 grid steps so v7x can shard the batch over its two
        # TensorCores, cap at 2048 rows (double-buffered tile ~1 MiB of VMEM).
        bs128 = max(128, _round_up(bs, 128))
        block_m = min(2048, max(128, _round_up(bs128 // 2, 128)))
    block_m = _round_up(block_m, 128)
    bs_pad = _round_up(max(bs, 1), block_m)
    n_tiles = bs_pad // block_m

    # Layout plumbing (one concat / pad / transpose) + trace-time weight fold.
    packed = _pack_inputs(food_intent, service_intent, ambience_intent,
                          price_intent, price_differ, cate_differ,
                          location_differ, u_id_embd, i_id_embd)
    packed = jnp.pad(packed, ((0, bs_pad - bs), (0, 0)))
    packed_t = packed.T                                          # [128, bs_pad] bf16
    w_comb_t, slab = _fold_params(params)

    weight_bytes = int(w_comb_t.size) * 2 + int(slab.size) * 4
    cost = pl.CostEstimate(
        flops=2 * bs_pad * (PACK_DIM * PRED_DIM0 + PRED_DIM0),
        transcendentals=bs_pad,
        bytes_accessed=bs_pad * (PACK_DIM * 2 + 4) + weight_bytes,
    )

    out = pl.pallas_call(
        _image_share_kernel,
        out_shape=jax.ShapeDtypeStruct((1, bs_pad), f32),
        grid_spec=pltpu.PrefetchScalarGridSpec(
            num_scalar_prefetch=0,
            grid=(n_tiles,),
            in_specs=[
                pl.BlockSpec((PACK_DIM, block_m), lambda i: (0, i)),    # activations
                pl.BlockSpec((PRED_DIM0, PACK_DIM), lambda i: (0, 0)),  # folded weight (resident)
                pl.BlockSpec((PRED_DIM0, 3), lambda i: (0, 0)),         # bias | w2 | b2 (resident)
            ],
            out_specs=pl.BlockSpec((1, block_m), lambda i: (0, i)),     # lane-dense output
        ),
        compiler_params=pltpu.CompilerParams(
            dimension_semantics=("parallel",)),   # v7x: shard batch across 2 TCs
        cost_estimate=cost,
    )(packed_t, w_comb_t, slab)

    return out[0, :bs].reshape(bs, PRED_DIM1)


# --------------------------------- main --------------------------------------
if __name__ == "__main__":
    key = jax.random.PRNGKey(0)
    k_param, k_in = jax.random.split(key)
    params = init_params(k_param)

    bs = 300  # not a multiple of 128 -> exercises padding + a multi-tile grid
    ks = jax.random.split(k_in, 11)
    rating_ref = jax.random.normal(ks[0], (bs, 1), jnp.float32)            # unused
    food_intent = jax.random.normal(ks[1], (bs, INTENT_DIM), jnp.float32)
    service_intent = jax.random.normal(ks[2], (bs, INTENT_DIM), jnp.float32)
    ambience_intent = jax.random.normal(ks[3], (bs, INTENT_DIM), jnp.float32)
    price_intent = jax.random.normal(ks[4], (bs, INTENT_DIM), jnp.float32)
    price_differ = jax.random.normal(ks[5], (bs,), jnp.float32)
    cate_differ = jax.random.randint(ks[6], (bs,), 0, CATE_NUM, jnp.int32)
    location_differ = jax.random.randint(ks[7], (bs,), 0, LOC_NUM, jnp.int32)
    hist_post_img = jax.random.normal(ks[8], (bs, 3, 8, 8), jnp.float32)   # unused
    u_id_embd = jax.random.normal(ks[9], (bs, ID_EMBD), jnp.float32)
    i_id_embd = jax.random.normal(ks[10], (bs, ID_EMBD), jnp.float32)

    args = (params, rating_ref, food_intent, service_intent, ambience_intent,
            price_intent, price_differ, cate_differ, location_differ,
            hist_post_img, u_id_embd, i_id_embd)

    out = jax.block_until_ready(image_share_predictor(*args, block_m=128))   # 3 tiles
    out_default = jax.block_until_ready(image_share_predictor(*args))        # default tiling
    assert out.shape == (bs, PRED_DIM1)
    assert jnp.allclose(out, out_default, atol=1e-6, rtol=1e-6), \
        float(jnp.max(jnp.abs(out - out_default)))

    # ------------------------------ references -------------------------------
    def reference_f32():
        """Pure-f32 PyTorch semantics: no folding, no bf16, real embedding gather."""
        f = jnp.float32
        ic = jnp.concatenate([food_intent, service_intent, ambience_intent,
                              price_intent], axis=1).astype(f)
        ip = ic @ params["w_intent"] + params["b_intent"]
        pv = price_differ.reshape(bs, 1).astype(f) @ params["w_price"] + params["b_price"]
        lv = params["loc_table"][location_differ]
        cv = params["cate_table"][cate_differ]
        cat = jnp.concatenate([ip, pv, lv, cv,
                               u_id_embd.astype(f), i_id_embd.astype(f)], axis=1)
        h = jnp.maximum(cat @ params["w1"] + params["b1"], 0.0)
        logits = jnp.sum(h * params["w2_row"], axis=-1, keepdims=True) + params["b2"]
        return jax.nn.sigmoid(logits)

    def reference_folded_bf16():
        """Same folded / packed bf16 numerics as the kernel (tight check)."""
        w_comb_t, slab = _fold_params(params)
        packed = _pack_inputs(food_intent, service_intent, ambience_intent,
                              price_intent, price_differ, cate_differ,
                              location_differ, u_id_embd, i_id_embd)
        h = jnp.dot(packed, w_comb_t.T,
                    preferred_element_type=jnp.float32) + slab[:, 0]
        h = jnp.maximum(h, 0.0)
        logits = h @ slab[:, 1:2] + slab[0, 2]
        return jax.nn.sigmoid(logits)

    ref_tight = reference_folded_bf16()   # kernel numerics (bf16 fold) — tight
    ref_f32 = reference_f32()             # pure f32 == PyTorch semantics — loose
    assert jnp.allclose(out, ref_tight, atol=2e-3, rtol=2e-3), \
        float(jnp.max(jnp.abs(out - ref_tight)))
    assert jnp.allclose(out, ref_f32, atol=3e-2, rtol=3e-2), \
        float(jnp.max(jnp.abs(out - ref_f32)))

    print("KERNEL_OK")
</pallas_src>

<mosaic_0001>
module attributes {stable_mosaic.version = 11 : i64} {
  func.func @_image_share_kernel(%arg0: i32, %arg1: memref<128x128xbf16, #tpu.memory_space<vmem>>, %arg2: memref<64x128xbf16, #tpu.memory_space<vmem>>, %arg3: memref<64x3xf32, #tpu.memory_space<vmem>>, %arg4: memref<1x128xf32, #tpu.memory_space<vmem>>) attributes {dimension_semantics = [#tpu.dimension_semantics<parallel>], iteration_bounds = array<i64: 3>, scalar_prefetch = 0 : i64, scratch_operands = 0 : i64, tpu.core_type = #tpu.core_type<tc>, window_params = [{transform_indices = @transform_0, window_bounds = array<i64: 128, 128>}, {pipeline_mode = #tpu.pipeline_mode<synchronous>, transform_indices = @transform_1, window_bounds = array<i64: 64, 128>}, {pipeline_mode = #tpu.pipeline_mode<synchronous>, transform_indices = @transform_2, window_bounds = array<i64: 64, 3>}, {transform_indices = @transform_3, window_bounds = array<i64: 1, 128>}]} {
    %c0 = arith.constant 0 : index
    %c0_0 = arith.constant 0 : index
    %0 = vector.load %arg2[%c0, %c0_0] : memref<64x128xbf16, #tpu.memory_space<vmem>>, vector<64x128xbf16>
    %c0_1 = arith.constant 0 : index
    %c0_2 = arith.constant 0 : index
    %1 = vector.load %arg1[%c0_1, %c0_2] : memref<128x128xbf16, #tpu.memory_space<vmem>>, vector<128x128xbf16>
    %cst = arith.constant dense<0.000000e+00> : vector<64x128xf32>
    %2 = tpu.matmul %0, %1, %cst {dimension_numbers = #tpu.dot_dimension_numbers<[1], [0], [0], [1], [0, 0, 1, 1], [], []>} : vector<64x128xbf16>, vector<128x128xbf16>, vector<64x128xf32> -> vector<64x128xf32>
    %c0_3 = arith.constant 0 : index
    %c0_4 = arith.constant 0 : index
    %3 = vector.load %arg3[%c0_3, %c0_4] : memref<64x3xf32, #tpu.memory_space<vmem>>, vector<64x1xf32>
    %4 = vector.broadcast %3 : vector<64x1xf32> to vector<64x128xf32>
    %5 = arith.addf %2, %4 : vector<64x128xf32>
    %cst_5 = arith.constant 0.000000e+00 : f32
    %6 = vector.broadcast %cst_5 : f32 to vector<64x128xf32>
    %7 = arith.maximumf %5, %6 : vector<64x128xf32>
    %c0_6 = arith.constant 0 : index
    %c1 = arith.constant 1 : index
    %8 = vector.load %arg3[%c0_6, %c1] : memref<64x3xf32, #tpu.memory_space<vmem>>, vector<64x1xf32>
    %9 = vector.broadcast %8 : vector<64x1xf32> to vector<64x128xf32>
    %10 = arith.mulf %7, %9 : vector<64x128xf32>
    %cst_7 = arith.constant dense<0.000000e+00> : vector<128xf32>
    %11 = vector.multi_reduction <add>, %10, %cst_7 [0] : vector<64x128xf32> to vector<128xf32>
    %12 = vector.shape_cast %11 : vector<128xf32> to vector<1x128xf32>
    %c0_8 = arith.constant 0 : index
    %c2 = arith.constant 2 : index
    %13 = vector.load %arg3[%c0_8, %c2] : memref<64x3xf32, #tpu.memory_space<vmem>>, vector<1x1xf32>
    %14 = vector.broadcast %13 : vector<1x1xf32> to vector<1x128xf32>
    %15 = arith.addf %12, %14 : vector<1x128xf32>
    %16 = arith.negf %15 : vector<1x128xf32>
    %17 = math.exp %16 : vector<1x128xf32>
    %cst_9 = arith.constant 1.000000e+00 : f32
    %18 = vector.broadcast %cst_9 : f32 to vector<1x128xf32>
    %19 = arith.addf %18, %17 : vector<1x128xf32>
    %20 = arith.divf %18, %19 : vector<1x128xf32>
    %c0_10 = arith.constant 0 : index
    %c0_11 = arith.constant 0 : index
    %21 = vector.load %arg4[%c0_10, %c0_11] : memref<1x128xf32, #tpu.memory_space<vmem>>, vector<1x128xf32>
    tpu.vector_store %arg4[%c0_10, %c0_11], %20 {strides = array<i32>} : memref<1x128xf32, #tpu.memory_space<vmem>>, vector<1x128xf32>,
    return
  }
  func.func @transform_0(%arg0: i32) -> (i32, i32) {
    %c0_i32 = arith.constant 0 : i32
    %c0_i32_0 = arith.constant 0 : i32
    return %c0_i32, %arg0 : i32, i32
  }
  func.func @transform_1(%arg0: i32) -> (i32, i32) {
    %c0_i32 = arith.constant 0 : i32
    %c0_i32_0 = arith.constant 0 : i32
    %c0_i32_1 = arith.constant 0 : i32
    return %c0_i32, %c0_i32_0 : i32, i32
  }
  func.func @transform_2(%arg0: i32) -> (i32, i32) {
    %c0_i32 = arith.constant 0 : i32
    %c0_i32_0 = arith.constant 0 : i32
    %c0_i32_1 = arith.constant 0 : i32
    return %c0_i32, %c0_i32_0 : i32, i32
  }
  func.func @transform_3(%arg0: i32) -> (i32, i32) {
    %c0_i32 = arith.constant 0 : i32
    %c0_i32_0 = arith.constant 0 : i32
    return %c0_i32, %arg0 : i32, i32
  }
}

</mosaic_0001>

<bundles_post_ra>
// kernel: tpu_custom_call.1
= control target key start
LH: loop header
LB: loop body
LE: loop exit
PB: predicated region body
PF: predicated region fallthrough
CT: control target
= control target key end

     0   :  { %8 = vsyncpa [#allocation3], 0  ;;  %s1038_s0 = inlined_call_operand.hbm [shape: bf16[128,384], index: 0, kind: input, shape index: {}]   ;;  %s1039_s1 = inlined_call_operand.vmem [shape: bf16[64,128], index: 1, kind: input, shape index: {}]   ;;  %s1040_s2 = inlined_call_operand.vmem [shape: f32[64,3], index: 2, kind: input, shape index: {}]   ;;  %s1041_s3 = inlined_call_operand.hbm [shape: f32[1,384], index: 3, kind: output, shape index: {}]  }
   0x1   :  { %10 = vsyncpa [#allocation3 + $0x1], 0 }
   0x2   :  { %11 = vsyncpa [#allocation4], 0 }
   0x3   :  { %13 = vsyncpa [#allocation4 + $0x1], 0  ;;  %s828_s12 = smov 0   ;;  %s830_s13 = smov 0  }
   0x4   :  { %s832_s14 = smov 0   ;;  %s834_s15 = smov 0  }
   0x5 LB: > { %s849_s16 = sadd.s32 4294967295, %s798_s15   ;;  %s551_s17 = sadd.s32 4294967294, %s798_s15   ;;  %s798_s15 = sphi %s834_s15, %s1054_s15   ;;  %s794_s14 = sphi %s832_s14, %s1053_s14   ;;  %s790_s13 = sphi %s830_s13, %s1052_s13   ;;  %s786_s12 = sphi %s828_s12, %s1051_s12  }
   0x6   : > { %s853_s18 = sadd.s32 1, %s798_s15   ;;  %s26_s19 = sadd.s32 1, %s794_s14 }
   0x7   : > { %s23_s20 = ssub.s32 %s798_s15, %s853_s18  ;;  %p33_p0 = scmp.ne.s32.totalorder %s794_s14, %s790_s13 }
   0x8   : > { %p24_p1 = scmp.eq.s32.totalorder %s23_s20, 0  ;;  %p34_p2 = scmp.eq.s32.totalorder %s798_s15, 0 }
   0x9   : > { %p39_p3 = scmp.ne.s32.totalorder %s790_s13, %s786_s12  ;;  %p40_p4 = scmp.eq.s32.totalorder %s849_s16, 0 }
   0xa   : > { %s865_s21 = scalar_select %p24_p1, %s794_s14, %s26_s19  }
   0xb   : > { %p867_p5 = por %p34_p2, %p33_p0  ;;  %p871_p6 = por %p40_p4, %p39_p3 }
   0xc   : > { %p105_p7 = scmp.eq.s32.totalorder %s849_s16, 2  ;;  %p111_p8 = scmp.eq.s32.totalorder %s551_s17, 2 }
   0xd   : > { %p638_p9 = scmp.lt.s32.totalorder %s798_s15, 3  ;;  %s137_s26 = sand.u32 1, %s794_s14  }
   0xe   : > { %p877_p10 = por %p105_p7, %p33_p0  ;;  %p881_p11 = por %p111_p8, %p39_p3 }
   0xf   : > { %s555_s27 = sshll.u32 %s798_s15, 6  ;;  %s554_s28 = sshll.u32 %s137_s26, 6 }
  0x10   : > { %s1045_s24 = scalar_select %p877_p10, 1, 0 }
  0x11   : > { %s1046_s25 = scalar_select %p881_p11, 1, 0 }
  0x12   : > { %s890_s4 = scalar_lea.hbm %s1038_s0, %s555_s27  ;;  %s141_s5 = scalar_lea.vmem [#allocation2], %s554_s28 }
  0x13   : > { %s147_s6 = sshll.u32 %s141_s5, 4  ;;  %p894_p12 = pnand %p638_p9, %p867_p5  ;;  %s898_s6 = int_to_ptr.vmem [resolvable:$true] %s147_s6 }
  0x14   : > { %s901_s8 = scalar_lea.sflag [#allocation3], %s137_s26  ;;  %s702_s9 = scalar_lea.hbm %s890_s4, 1024 }
  0x15   : > { %p703_p0 = scmp.ne.s32.totalorder %s890_s4, %s702_s9  ;;  %p704_p1 = pneg %p894_p12 }
  0x16   : > { %s707_s17 = scalar_lea.hbm %s1038_s0, 3072  ;;  %p708_p4 = scmp.lt.u32.totalorder %s890_s4, %s1038_s0 }
  0x17   : > { %p705_p2 = pnand %p704_p1, %p703_p0  ;;  %p709_p5 = scmp.lt.u32.totalorder %s707_s17, %s702_s9 }
  0x18   : > { %p711_p8 = scmp.lt.u32.totalorder %s702_s9, %s890_s4 }
  0x19   : > { %p706_p3 = pneg %p705_p2  ;;  %p710_p7 = por %p709_p5, %p708_p4 }
  0x1b   : > { %p712_p9 = por %p711_p8, %p710_p7 }
  0x1d   : > { %p713_p13 = pnand %p712_p9, %p706_p3 }
  0x1f   : > { %716 = shalt.err (!%p713_p13)
}
  0x20   : > { %s717_s22 = scalar_lea.vmem %s898_s6, 1024  ;;  %s800_s26 = smov [#allocation2]  }
  0x21   : > { %p718_p0 = scmp.ne.s32.totalorder %s898_s6, %s717_s22  ;;  %s722_s27 = sshll.u32 %s800_s26, 4  ;;  %s723_s27 = int_to_ptr.vmem [resolvable:$false] %s722_s27 }
  0x22   : > { %s724_s28 = scalar_lea.vmem %s723_s27, 2048  ;;  %p725_p10 = scmp.lt.s32.totalorder %s898_s6, %s723_s27 }
  0x23   : > { %p720_p2 = pnand %p718_p0, %p704_p1  ;;  %p726_p4 = scmp.lt.s32.totalorder %s724_s28, %s717_s22 }
  0x25   : > { %p721_p11 = pneg %p720_p2  ;;  %p727_p5 = por %p726_p4, %p725_p10 }
  0x27   : > { %p728_p7 = pnand %p727_p5, %p721_p11 }
  0x29   : > { %731 = shalt.err (!%p728_p7)
}
  0x2a   : > { %s801_s29 = smov 192   ;;  %s802_s30 = smov 64  }
  0x2b   : > { %s803_s5 = smov 4   ;;  %p155_p13 = scmp.lt.s32.totalorder %s798_s15, 4 }
  0x2c   : > { %633 = dma.hbm_to_vmem [thread:$0]  (!%p894_p12), %s890_s4, 1024, %s898_s6, %s901_s8, %s801_s29, %s802_s30, %s803_s5  }
  0x2d   : > { %p1048_p1 = scmp.ge.s32.totalorder %s798_s15, 1 }
  0x2f   : > { %p156_p3 = pnand %p1048_p1, %p155_p13 }
  0x30   : > { %s933_s9 = sand.u32 (!%p156_p3), 1, %s790_s13  }
  0x31   : > { %159 = sbr.rel (%p156_p3) target bundleno = 380 (0x17c), region = 32  ;;  %s557_s10 = sshll.u32 (!%p156_p3), %s933_s9, 6 }
  0x32   : > { %s162_s11 = scalar_lea.sflag (!%p156_p3), [#allocation3], %s933_s9  ;;  %s937_s17 = scalar_lea.vmem (!%p156_p3), [#allocation2], %s557_s10 }
  0x38   : > { %777 = dma.done.wait (%p871_p6), %s162_s11, 1024  }
  0x39   : > { %779 = vsyncadd (%p871_p6), %s162_s11, 4294966272  ;;  %v804_v0 = vmov 0   ;;  %v686_v1 = vld [vmem:[%s937_s17] sm:$0xff]   ;;  %v687_v2 = vld [vmem:[%s937_s17 + $0x8] sm:$0xff]   ;;  %v805_v14 = vmov 1   ;;  %v806_v22 = vmov 2  }
  0x3a   : > { %678 = vset.pattern.permute.xlu0 %v804_v0  ;;  %679 = vset.pattern.permute.xlu1 %v804_v0  ;;  %v688_v3 = vld [vmem:[%s937_s17 + $0x10] sm:$0xff]   ;;  %v689_v4 = vld [vmem:[%s937_s17 + $0x18] sm:$0xff]   ;;  %v694_v5 = vld [vmem:[%s1039_s1] sm:$0xff]   ;;  %s571_s27 = sshll.u32 %s849_s16, 4  ;;  %s186_s28 = scalar_lea.vmem [#allocation5], %s933_s9 }
  0x3b   : > { %586 = vmatprep.subr.bf16.mxu0 %v686_v1  ;;  %610 = vmatprep.subr.bf16.mxu1 %v686_v1  ;;  %v695_v6 = vld [vmem:[%s1039_s1 + $0x10] sm:$0xff]   ;;  %v690_v7 = vld [vmem:[%s937_s17 + $0x20] sm:$0xff]   ;;  %v213_v10 = vld [vmem:[%s1040_s2 + $0x8] sm:$0xff]  ;;  %s485_s29 = sshll.u32 %s186_s28, 4  ;;  %s995_s10 = scalar_lea.hbm %s1041_s3, %s571_s27  ;;  %s997_s29 = int_to_ptr.vmem [resolvable:$true] %s485_s29 }
  0x3c   : > { %587 = vmatpush3.bf16.msra.mxu0 %v686_v1  ;;  %618 = vmatpush3.bf16.msra.mxu1 %v686_v1  ;;  %v212_v8 = vld [vmem:[%s1040_s2] sm:$0xff]  ;;  %v214_v9 = vld [vmem:[%s1040_s2 + $0x10] sm:$0xff]  ;;  %v215_v11 = vld [vmem:[%s1040_s2 + $0x18] sm:$0xff]  ;;  %s473_s11 = scalar_lea.sflag [#allocation4], %s933_s9  ;;  %s732_s23 = scalar_lea.vmem %s997_s29, 16 }
  0x3d   : > { %588 = vmatprep.subr.bf16.mxu0 %v687_v2  ;;  %611 = vmatprep.subr.bf16.mxu1 %v687_v2  ;;  %v691_v12 = vld [vmem:[%s937_s17 + $0x28] sm:$0xff]   ;;  %v692_v13 = vld [vmem:[%s937_s17 + $0x30] sm:$0xff]   ;;  %v693_v15 = vld [vmem:[%s937_s17 + $0x38] sm:$0xff]   ;;  %p733_p6 = scmp.ne.s32.totalorder %s997_s29, %s732_s23  ;;  %p1049_p10 = scmp.ne.s32.totalorder %s1045_s24, 0 }
  0x3e   : > { %602 = vmatprep.mubr.bf16.mxu0 %v694_v5  ;;  %606 = vmatprep.mubr.bf16.mxu1 %v695_v6  ;;  %v216_v16 = vld [vmem:[%s1040_s2 + $0x20] sm:$0xff]  ;;  %v696_v17 = vld [vmem:[%s1039_s1 + $0x8] sm:$0xff]   ;;  %v697_v18 = vld [vmem:[%s1039_s1 + $0x18] sm:$0xff]   ;;  %s807_s16 = smov [#allocation5]  }
  0x3f   : > { %222 = vperm.xlu0 %678, %v212_v8   ;;  %232 = vperm.xlu1 %679, %v214_v9   ;;  %v217_v19 = vld [vmem:[%s1040_s2 + $0x28] sm:$0xff]  ;;  %v218_v20 = vld [vmem:[%s1040_s2 + $0x30] sm:$0xff]  ;;  %v219_v21 = vld [vmem:[%s1040_s2 + $0x38] sm:$0xff]  ;;  %p734_p11 = pnand %p733_p6, %p1049_p10  ;;  %s736_s4 = sshll.u32 %s807_s16, 4  ;;  %s737_s4 = int_to_ptr.vmem [resolvable:$false] %s736_s4 }
  0x40   : > { %589 = vmatpush3.bf16.msra.mxu0 %v687_v2  ;;  %619 = vmatpush3.bf16.msra.mxu1 %v687_v2  ;;  %v458_v23 = vld [vmem:[%s1040_s2] sm:$0x1]  ;;  %s738_s17 = scalar_lea.vmem %s737_s4, 32  ;;  %p739_p8 = scmp.lt.s32.totalorder %s997_s29, %s737_s4 }
  0x41   : > { %590 = vmatprep.subr.bf16.mxu0 %v688_v3  ;;  %612 = vmatprep.subr.bf16.mxu1 %v688_v3  ;;  %p735_p12 = pneg %p734_p11  ;;  %p740_p9 = scmp.lt.s32.totalorder %s738_s17, %s732_s23 }
  0x43   : > { %227 = vperm.xlu0 %678, %v213_v10   ;;  %237 = vperm.xlu1 %679, %v215_v11   ;;  %p741_p0 = por %p740_p9, %p739_p8 }
  0x44   : > { %591 = vmatpush3.bf16.msra.mxu0 %v688_v3  ;;  %620 = vmatpush3.bf16.msra.mxu1 %v688_v3 }
  0x45   : > { %592 = vmatprep.subr.bf16.mxu0 %v689_v4  ;;  %613 = vmatprep.subr.bf16.mxu1 %v689_v4  ;;  %p742_p2 = pnand %p741_p0, %p735_p12 }
  0x47   : > { %680 = vset.pattern.permute.xlu0 %v805_v14  ;;  %681 = vset.pattern.permute.xlu1 %v805_v14 }
  0x48   : > { %593 = vmatpush3.bf16.msra.mxu0 %v689_v4  ;;  %621 = vmatpush3.bf16.msra.mxu1 %v689_v4 }
  0x49   : > { %594 = vmatprep.subr.bf16.mxu0 %v690_v7  ;;  %614 = vmatprep.subr.bf16.mxu1 %v690_v7 }
  0x4a   : > { %406 = vperm.xlu0 %680, %v212_v8   ;;  %410 = vperm.xlu1 %681, %v213_v10  }
  0x4c   : > { %595 = vmatpush3.bf16.msra.mxu0 %v690_v7  ;;  %622 = vmatpush3.bf16.msra.mxu1 %v690_v7 }
  0x4d   : > { %596 = vmatprep.subr.bf16.mxu0 %v691_v12  ;;  %615 = vmatprep.subr.bf16.mxu1 %v691_v12 }
  0x4e   : > { %414 = vperm.xlu0 %680, %v214_v9   ;;  %682 = vset.pattern.permute.xlu1 %v804_v0 }
  0x4f   : > { %242 = vperm.xlu1 %682, %v216_v16  }
  0x50   : > { %597 = vmatpush3.bf16.msra.mxu0 %v691_v12  ;;  %623 = vmatpush3.bf16.msra.mxu1 %v691_v12 }
  0x51   : > { %598 = vmatprep.subr.bf16.mxu0 %v692_v13  ;;  %616 = vmatprep.subr.bf16.mxu1 %v692_v13 }
  0x52   : > { %418 = vperm.xlu0 %680, %v215_v11  }
  0x53   : > { %247 = vperm.xlu1 %682, %v217_v19  }
  0x54   : > { %599 = vmatpush3.bf16.msra.mxu0 %v692_v13  ;;  %624 = vmatpush3.bf16.msra.mxu1 %v692_v13 }
  0x55   : > { %600 = vmatprep.subr.bf16.mxu0 %v693_v15  ;;  %617 = vmatprep.subr.bf16.mxu1 %v693_v15 }
  0x56   : > { %422 = vperm.xlu0 %680, %v216_v16  }
  0x57   : > { %252 = vperm.xlu1 %682, %v218_v20  }
  0x58   : > { %601 = vmatpush3.bf16.msra.mxu0 %v693_v15  ;;  %625 = vmatpush3.bf16.msra.mxu1 %v693_v15 }
  0x5a   : > { %426 = vperm.xlu0 %680, %v217_v19  }
  0x5b   : > { %603 = vmatmul.mubr.bf16.vlgmr.msra.gmra.mrb[0].mxu0 %v696_v17  ;;  %607 = vmatmul.mubr.bf16.vlgmr.msra.gmra.mrb[0].mxu1 %v697_v18 }
  0x5c   : > { %257 = vperm.xlu1 %682, %v219_v21  }
  0x5e   : > { %434 = vperm.xlu0 %680, %v219_v21  }
  0x60   : > { %683 = vset.pattern.permute.xlu1 %v805_v14 }
  0x61   : > { %430 = vperm.xlu1 %683, %v218_v20  }
  0x62   : > { %685 = vset.pattern.permute.xlu0 %v806_v22 }
  0x65   : > { %684 = vset.pattern.permute.xlu1 %v806_v22 }
  0x66   : > { %461 = vperm.xlu1 %684, %v458_v23  }
  0xbe   : > { %v233_v24 = vpop.permute.xlu1 %232  ;;  %v223_v25 = vpop.permute.xlu0 %222 }
  0xc2   : > { %v238_v26 = vpop.permute.xlu1 %237  ;;  %v228_v27 = vpop.permute.xlu0 %227 }
  0xc9   : > { %v411_v28 = vpop.permute.xlu1 %410  ;;  %v407_v29 = vpop.permute.xlu0 %406 }
  0xcd   : > { %v415_v31 = vpop.permute.xlu0 %414 }
  0xce   : > { %v243_v30 = vpop.permute.xlu1 %242 }
  0xd1   : > { %v419_v33 = vpop.permute.xlu0 %418 }
  0xd2   : > { %v248_v32 = vpop.permute.xlu1 %247 }
  0xd5   : > { %v423_v51 = vpop.permute.xlu0 %422 }
  0xd6   : > { %v253_v34 = vpop.permute.xlu1 %252 }
  0xd9   : > { %v427_v1 = vpop.permute.xlu0 %426 }
  0xdb   : > { %v258_v56 = vpop.permute.xlu1 %257 }
  0xdd   : > { %v435_v11 = vpop.permute.xlu0 %434 }
  0xe0   : > { %v431_v5 = vpop.permute.xlu1 %430 }
  0xe5   : > { %v462_v20 = vpop.permute.xlu1 %461 }
 0x12e   : > { %v604_v35 = vpop.f32.mrb[0].mxu0  ;;  %v608_v36 = vpop.f32.mrb[0].mxu1 }
 0x12f   : > { %v366_v37 = vpop.f32.mrb[1].mxu0  ;;  %v382_v38 = vpop.f32.mrb[1].mxu1  ;;  %v375_v39 = vadd.f32 %v604_v35, %v233_v24  ;;  %v391_v58 = vadd.f32 %v608_v36, %v253_v34 }
 0x130   : > { %v367_v40 = vadd.f32 %v366_v37, %v223_v25  ;;  %v605_v41 = vpop.f32.mrb[2].mxu0  ;;  %v609_v42 = vpop.f32.mrb[2].mxu1  ;;  %v383_v49 = vadd.f32 %v382_v38, %v243_v30 }
 0x131   : > { %v369_v43 = vpop.f32.mrb[3].mxu0  ;;  %v385_v44 = vpop.f32.mrb[3].mxu1  ;;  %v378_v46 = vadd.f32 %v605_v41, %v238_v26  ;;  %v399_v48 = vmax.f32 %v375_v39, 0.0  ;;  %v394_v62 = vadd.f32 %v609_v42, %v258_v56  ;;  %v403_v2 = vmax.f32 %v391_v58, 0.0 }
 0x132   : > { %v397_v45 = vmax.f32 %v367_v40, 0.0  ;;  %v370_v47 = vadd.f32 %v369_v43, %v228_v27  ;;  %v386_v55 = vadd.f32 %v385_v44, %v248_v32  ;;  %v401_v59 = vmax.f32 %v383_v49, 0.0 }
 0x133   : > { %v400_v53 = vmax.f32 %v378_v46, 0.0  ;;  %v439_v57 = vmul.f32 %v415_v31, %v399_v48  ;;  %v404_v6 = vmax.f32 %v394_v62, 0.0  ;;  %v443_v9 = vmul.f32 %v431_v5, %v403_v2 }
 0x134   : > { %v398_v50 = vmax.f32 %v370_v47, 0.0  ;;  %v437_v52 = vmul.f32 %v407_v29, %v397_v45  ;;  %v402_v0 = vmax.f32 %v386_v55, 0.0  ;;  %v441_v3 = vmul.f32 %v423_v51, %v401_v59 }
 0x135   : > { %v440_v61 = vmul.f32 %v419_v33, %v400_v53  ;;  %v444_v12 = vmul.f32 %v435_v11, %v404_v6 }
 0x136   : > { %v438_v54 = vmul.f32 %v411_v28, %v398_v50  ;;  %v442_v7 = vmul.f32 %v427_v1, %v402_v0 }
 0x138   : > { %v445_v60 = vadd.f32 %v438_v54, %v437_v52 }
 0x13a   : > { %v446_v63 = vadd.f32 %v445_v60, %v439_v57 }
 0x13c   : > { %v447_v4 = vadd.f32 %v446_v63, %v440_v61 }
 0x13e   : > { %v448_v8 = vadd.f32 %v447_v4, %v441_v3 }
 0x140   : > { %v449_v10 = vadd.f32 %v448_v8, %v442_v7 }
 0x142   : > { %v450_v13 = vadd.f32 %v449_v10, %v443_v9 }
 0x144   : > { %v451_v14 = vadd.f32 %v450_v13, %v444_v12 }
 0x146   : > { %v452_v15 = vrot.slane %v451_v14, 4 }
 0x148   : > { %v453_v16 = vadd.f32 %v452_v15, %v451_v14 }
 0x14a   : > { %v454_v17 = vrot.slane %v453_v16, 2 }
 0x14c   : > { %v455_v18 = vadd.f32 %v454_v17, %v453_v16 }
 0x14e   : > { %v456_v19 = vrot.slane %v455_v18, 1 }
 0x150   : > { %v457_v21 = vadd.f32 %v456_v19, %v455_v18 }
 0x152   : > { %v464_v22 = vadd.f32 %v462_v20, %v457_v21 }
 0x154   : > { %v570_v23 = vmul.f32 -1.442695, %v464_v22 }
 0x156   : > { %698 = vpow2.f32 %v570_v23 }
 0x160   : > { %v699_v24 = vpop.eup %698 }
 0x161   : > { %v468_v25 = vadd.f32 1.0, %v699_v24 }
 0x163   : > { %700 = vrcp.f32 %v468_v25 }
 0x16d   : > { %v701_v26 = vpop.eup %700 }
 0x16e   : > { %471 = vst [vmem:[%s186_s28] sm:$0x1] %v701_v26 }
 0x16f   : > { %745 = shalt.err (!%p742_p2)
}
 0x170   : > { %s746_s9 = scalar_lea.hbm %s995_s10, 16  ;;  %s750_s8 = scalar_lea.hbm %s1041_s3, 48 }
 0x171   : > { %p747_p4 = scmp.ne.s32.totalorder %s995_s10, %s746_s9  ;;  %p751_p13 = scmp.lt.u32.totalorder %s995_s10, %s1041_s3 }
 0x172   : > { %p752_p1 = scmp.lt.u32.totalorder %s750_s8, %s746_s9  ;;  %p754_p6 = scmp.lt.u32.totalorder %s746_s9, %s995_s10 }
 0x173   : > { %p748_p5 = pnand %p747_p4, %p1049_p10 }
 0x174   : > { %p753_p3 = por %p752_p1, %p751_p13 }
 0x175   : > { %p749_p7 = pneg %p748_p5 }
 0x176   : > { %p755_p11 = por %p754_p6, %p753_p3 }
 0x178   : > { %p756_p12 = pnand %p755_p11, %p749_p7 }
 0x17a   : > { %759 = shalt.err (!%p756_p12)
}
 0x17b   : > { %628 = dma.vmem_to_hbm [thread:$0]  (%p1049_p10), %s997_s29, 16, %s995_s10, %s473_s11  }
 0x17c PF: > { %p639_p8 = scmp.ge.s32.totalorder %s798_s15, 2  ;;  %s497_s22 = sand.u32 1, %s786_s12  }
 0x17d   : > { %p1050_p9 = scmp.ne.s32.totalorder %s1046_s25, 0  ;;  %s498_s26 = scalar_lea.sflag [#allocation4], %s497_s22 }
 0x17f   : > { %p635_p0 = pnand %p639_p8, %p1050_p9 }
 0x181   : > { %781 = dma.done.wait (!%p635_p0), %s498_s26, 16  }
 0x182   : > { %783 = vsyncadd (!%p635_p0), %s498_s26, 4294967280  ;;  %p16_p2 = scmp.ge.s32.totalorder %s853_s18, 5   ;;  %s1051_s12 = smov %s790_s13 }
 0x183   : > { %s1052_s13 = smov %s794_s14  ;;  %s1053_s14 = smov %s865_s21 }
 0x184   : > { %s1054_s15 = smov %s853_s18  ;;  %18 = sbr.rel (!%p16_p2) target bundleno = 5 (0x5), region = 77 }
 0x18b   :  { %502 = vsyncpa [#allocation3], 1 }
 0x18c   :  { %504 = vsyncpa [#allocation3 + $0x1], 1 }
 0x18d   :  { %505 = vsyncpa [#allocation4], 1 }
 0x18e   :  { %507 = vsyncpa [#allocation4 + $0x1], 1 }

</bundles_post_ra>
